<compile_context>
chip_gen: v5e
topology: v5e:2x2
jax: 0.10.0
libtpu: 0.0.40
codegen_flags: <defaults>
</compile_context>

<pallas_src>
import numpy as np

import jax
import jax.numpy as jnp
from jax.experimental import pallas as pl
from jax.experimental.pallas import tpu as pltpu


def _copy_kernel(x_ref, o_ref):
    # Pure VMEM tile copy (identity).
    o_ref[...] = x_ref[...]


def _sublane_min(dtype) -> int:
    """Minimum second-to-last tile dim for this dtype (8 f32, 16 bf16, 32 int8/fp8)."""
    bits = np.dtype(dtype).itemsize * 8
    return max(8, 256 // max(bits, 1))


def _vmem_budget():
    """(per-tile byte budget, vmem_limit_bytes), sized per TPU generation."""
    phys = 64 * 1024 * 1024  # conservative default: v7x physical VMEM per TC
    try:
        info = pltpu.get_tpu_info()
        phys = int(getattr(info, "vmem_capacity_bytes", phys))
    except Exception:
        pass
    # in + out, double-buffered => 4 tile-sized buffers in flight; keep them
    # well inside physical VMEM (<= phys/4 total).
    tile_budget = max(1 << 20, min(8 << 20, phys // 16))   # 4 MiB v7x, 8 MiB v5e/v6e
    vmem_limit = max(32 << 20, min(phys // 2, 96 << 20))    # 32 MiB v7x, 64 MiB v5e/v6e
    return tile_budget, vmem_limit


def _lane_dense_factorization(total: int, sublane_min: int):
    """(rows, cols) with cols a large multiple of 128; prefers rows >= sublane_min."""
    if total % 128 != 0:
        return None
    widest = None
    for cols in (8192, 4096, 2048, 1024, 512, 256, 128):
        if total % cols == 0:
            rows = total // cols
            if widest is None:
                widest = (rows, cols)
            if rows >= sublane_min:
                return rows, cols
    return widest


def _fallback_factorization(total: int, sublane_min: int):
    """Non-128-multiple totals: at least fill the 8 sublanes when possible."""
    for rows in (64, 32, 16, 8):
        if rows % sublane_min == 0 and total % rows == 0:
            return rows, total // rows
    return 1, total


def _pick_row_tile(rows, cols, itemsize, sublane_min, tile_budget, force_split):
    """Largest power-of-two multiple of sublane_min dividing rows, within budget."""
    row_bytes = max(1, cols * itemsize)
    cap = rows
    if force_split and rows >= 2 * sublane_min:
        cap = rows // 2  # guarantee >= 2 grid steps so both v7x TCs stream
    limit = min(cap, max(sublane_min, tile_budget // row_bytes))
    tr, best = sublane_min, None
    while tr <= limit:
        if rows % tr == 0:
            best = tr
        tr *= 2
    return best if best is not None else rows  # full-extent block is always legal


@jax.jit
def identify_forward(x: jax.Array) -> jax.Array:
    """Pallas implementation of Identify.forward(x) -> x (exact copy)."""
    orig_shape = x.shape
    total = x.size
    itemsize = np.dtype(x.dtype).itemsize
    smin = _sublane_min(x.dtype)
    tile_budget, vmem_limit = _vmem_budget()

    fact = _lane_dense_factorization(total, smin)
    if fact is None:
        fact = _fallback_factorization(total, smin)
    rows, cols = fact

    force_split = rows * cols * itemsize > (2 << 20)
    tr = _pick_row_tile(rows, cols, itemsize, smin, tile_budget, force_split)
    grid = (rows // tr,)

    x2d = x.reshape(rows, cols)

    out2d = pl.pallas_call(
        _copy_kernel,
        out_shape=jax.ShapeDtypeStruct((rows, cols), x.dtype),
        grid=grid,
        in_specs=[pl.BlockSpec((tr, cols), lambda i: (i, 0))],
        out_specs=pl.BlockSpec((tr, cols), lambda i: (i, 0)),
        compiler_params=pltpu.CompilerParams(
            dimension_semantics=("parallel",),
            vmem_limit_bytes=vmem_limit,
        ),
    )(x2d)

    return out2d.reshape(orig_shape)


if __name__ == "__main__":
    key = jax.random.PRNGKey(0)
    # NCHW input consistent with a typical conv-net feature map.
    x = jax.random.normal(key, (2, 4, 16, 16), dtype=jnp.float32)

    y = identify_forward(x)
    jax.block_until_ready(y)

    assert y.shape == x.shape and y.dtype == x.dtype
    assert bool(jnp.all(y == x))
    print("KERNEL_OK")
</pallas_src>

<mosaic_0001>
module attributes {stable_mosaic.version = 11 : i64} {
  func.func @_copy_kernel(%arg0: i32, %arg1: memref<8x256xf32, #tpu.memory_space<vmem>>, %arg2: memref<8x256xf32, #tpu.memory_space<vmem>>) attributes {dimension_semantics = [#tpu.dimension_semantics<parallel>], iteration_bounds = array<i64: 1>, scalar_prefetch = 0 : i64, scratch_operands = 0 : i64, tpu.core_type = #tpu.core_type<tc>, window_params = [{transform_indices = @transform_0, window_bounds = array<i64: 8, 256>}, {transform_indices = @transform_1, window_bounds = array<i64: 8, 256>}]} {
    %c0 = arith.constant 0 : index
    %c0_0 = arith.constant 0 : index
    %0 = vector.load %arg1[%c0, %c0_0] : memref<8x256xf32, #tpu.memory_space<vmem>>, vector<8x256xf32>
    %c0_1 = arith.constant 0 : index
    %c0_2 = arith.constant 0 : index
    %1 = vector.load %arg2[%c0_1, %c0_2] : memref<8x256xf32, #tpu.memory_space<vmem>>, vector<8x256xf32>
    tpu.vector_store %arg2[%c0_1, %c0_2], %0 {strides = array<i32>} : memref<8x256xf32, #tpu.memory_space<vmem>>, vector<8x256xf32>,
    return
  }
  func.func @transform_0(%arg0: i32) -> (i32, i32) {
    %c0_i32 = arith.constant 0 : i32
    %c0_i32_0 = arith.constant 0 : i32
    return %arg0, %c0_i32 : i32, i32
  }
  func.func @transform_1(%arg0: i32) -> (i32, i32) {
    %c0_i32 = arith.constant 0 : i32
    %c0_i32_0 = arith.constant 0 : i32
    return %arg0, %c0_i32 : i32, i32
  }
}

</mosaic_0001>

<bundles_post_ra>
// kernel: identify_forward.1
= control target key start
LH: loop header
LB: loop body
LE: loop exit
PB: predicated region body
PF: predicated region fallthrough
CT: control target
= control target key end

     0   :  { %s38_s0 = inlined_call_operand.vmem [shape: f32[8,256], index: 0, kind: input, shape index: {}]   ;;  %s39_s1 = inlined_call_operand.vmem [shape: f32[8,256], index: 1, kind: output, shape index: {}]  }
   0x1   :  { %v8_v0 = vld [vmem:[%s38_s0] sm:$0xff]  ;;  %v9_v1 = vld [vmem:[%s38_s0 + $0x8] sm:$0xff] }
   0x2   :  { %10 = vst [vmem:[%s39_s1] sm:$0xff] %v8_v0 }
   0x3   :  { %11 = vst [vmem:[%s39_s1 + $0x8] sm:$0xff] %v9_v1 }

</bundles_post_ra>
